<compile_context>
chip_gen: v7x
topology: tpu7x:2x2x1
jax: 0.10.0
libtpu: 0.0.40
codegen_flags: <defaults>
</compile_context>

<pallas_src>
import jax
import jax.numpy as jnp
from jax.experimental import pallas as pl
from jax.experimental.pallas import tpu as pltpu


# --------------------------------------------------------------------------
# Kernel
# --------------------------------------------------------------------------
def _critic_kernel(xa_ref, w1_ref, b1_ref, w2x_ref, w2a_ref, b2_ref, w3_ref,
                   o_ref):
    wdt = w1_ref.dtype                       # MXU input dtype (bf16 by default)
    xa = xa_ref[...].astype(wdt)             # [tm, input_dim + nb_actions]

    # fc1 + relu.  w1aug has zero rows for the action columns of xa, so this is
    # exactly relu(x @ W1.T + b1) on the padded hidden1 (relu(0)=0 on padding).
    h1 = jnp.dot(xa, w1_ref[...], preferred_element_type=jnp.float32)
    h1 = jnp.maximum(h1 + b1_ref[...], 0.0)

    # fc2 on cat([h1, a], 1) == h1 @ W2_x + a @ W2_a (+ b2), then relu.  The
    # action part is read straight from xa via zero rows in w2a.  Padded column
    # `hidden2` of b2 is 1 (its weight columns are 0), giving an exact ones
    # column that later carries fc3's bias.
    h2 = jnp.dot(h1.astype(wdt), w2x_ref[...], preferred_element_type=jnp.float32)
    h2 = h2 + jnp.dot(xa, w2a_ref[...], preferred_element_type=jnp.float32)
    h2 = jnp.maximum(h2 + b2_ref[...], 0.0)

    # fc3 (out_features == 1): VPU multiply + cross-lane reduce (keeps the MXU
    # free; XLU has slack under the fc2 matmul).  w3's column `hidden2` holds
    # b3, so the bias is included by the reduce.  Stored as a lane-dense row.
    q = jnp.sum(h2 * w3_ref[...], axis=-1, keepdims=True)   # [tm, 1] f32
    o_ref[0, :] = q[:, 0].astype(o_ref.dtype)                # -> (1, tm) row


# --------------------------------------------------------------------------
# Wrapper
# --------------------------------------------------------------------------
_MAX_TM = 512


def _round_up(n, m):
    return ((n + m - 1) // m) * m


def _pick_tm(batch):
    """Rows per grid step.

    <=256 rows: one tile (splitting only adds per-step overhead).  Larger:
    tiles capped at 512 rows with the grid kept >= 2, so the 'parallel' batch
    axis gives work to both TensorCores on v7x; 128-row alignment keeps the
    lane-dense output rows unmasked and input sublanes aligned.
    """
    if batch <= 256:
        return batch
    return min(_MAX_TM, _round_up(pl.cdiv(batch, 2), 128))


@jax.jit
def critic_forward(x, a, kp):
    """x: [B, input_dim] f32, a: [B, nb_actions] f32, kp: prepared params -> [B, 1]."""
    B = x.shape[0]
    xa = jnp.concatenate([x, a], axis=1)          # single activation stream
    in_total = xa.shape[1]
    h1p = kp["w1aug_t"].shape[1]
    h2p = kp["w2x_t"].shape[1]
    assert kp["w1aug_t"].shape[0] == in_total and kp["w2a_t"].shape[0] == in_total

    tm = _pick_tm(B)
    n_tiles = pl.cdiv(B, tm)

    batch_map = lambda i: (i, 0)
    const_map = lambda i: (0, 0)

    flops = 2 * B * (in_total * h1p + h1p * h2p + in_total * h2p + h2p)
    w_bytes = sum(int(v.size) * v.dtype.itemsize for v in kp.values())
    bytes_accessed = int(w_bytes + xa.size * xa.dtype.itemsize + n_tiles * tm * 4)

    out_rows = pl.pallas_call(
        _critic_kernel,
        out_shape=jax.ShapeDtypeStruct((n_tiles, tm), jnp.float32),
        grid=(n_tiles,),
        in_specs=[
            pl.BlockSpec((tm, in_total), batch_map),     # xa (pipelined per step)
            pl.BlockSpec((in_total, h1p), const_map),    # w1aug_t (VMEM resident)
            pl.BlockSpec((1, h1p), const_map),           # b1
            pl.BlockSpec((h1p, h2p), const_map),         # w2x_t
            pl.BlockSpec((in_total, h2p), const_map),    # w2a_t
            pl.BlockSpec((1, h2p), const_map),           # b2 (col hidden2 == 1)
            pl.BlockSpec((1, h2p), const_map),           # w3 (col hidden2 == b3)
        ],
        out_specs=pl.BlockSpec((1, tm), batch_map),      # lane-dense output rows
        compiler_params=pltpu.CompilerParams(
            dimension_semantics=("parallel",)),
        cost_estimate=pl.CostEstimate(
            flops=flops, transcendentals=0, bytes_accessed=bytes_accessed),
    )(xa, kp["w1aug_t"], kp["b1"], kp["w2x_t"], kp["w2a_t"], kp["b2"], kp["w3"])

    # Un-tile: row r of tile i is batch element i*tm + r; drop padded tail rows.
    return out_rows.reshape(n_tiles * tm)[:B].reshape(B, 1)


# --------------------------------------------------------------------------
# Parameter init (matches the PyTorch module) + one-time kernel-layout prep
# --------------------------------------------------------------------------
def init_critic_params(key, input_dim, nb_actions, hidden1=400, hidden2=300,
                       init_w=0.003):
    """Deterministic re-implementation of Critic.init_weights (fanin_init)."""
    k1, k2, k3, kb1, kb2, kb3 = jax.random.split(key, 6)

    def fanin_uniform(k, shape):
        # fanin_init uses size[0] of the torch weight tensor (= out_features)
        v = 1.0 / jnp.sqrt(jnp.asarray(shape[0], jnp.float32))
        return jax.random.uniform(k, shape, jnp.float32, minval=-v, maxval=v)

    def linear_bias_default(k, out_f, in_f):
        # nn.Linear default bias init: U(-1/sqrt(in_f), 1/sqrt(in_f))
        v = 1.0 / jnp.sqrt(jnp.asarray(in_f, jnp.float32))
        return jax.random.uniform(k, (out_f,), jnp.float32, minval=-v, maxval=v)

    w1 = fanin_uniform(k1, (hidden1, input_dim))
    w2 = fanin_uniform(k2, (hidden2, hidden1 + nb_actions))
    w3 = jax.random.uniform(k3, (1, hidden2), jnp.float32,
                            minval=-init_w, maxval=init_w)
    b1 = linear_bias_default(kb1, hidden1, input_dim)
    b2 = linear_bias_default(kb2, hidden2, hidden1 + nb_actions)
    b3 = linear_bias_default(kb3, 1, hidden2)
    return dict(w1=w1, b1=b1, w2=w2, b2=b2, w3=w3, b3=b3)


def prepare_critic_kernel_params(params, weight_dtype=jnp.bfloat16, lane=128):
    """One-time kernel-layout prep (redo after each soft/hard update, NOT per step).

    * transpose to [in, out] and split fc2's concat weight,
    * augment fc1 / fc2-action weights with zero rows so the kernel consumes a
      single concatenated [x, a] stream without any in-kernel slicing,
    * zero-pad hidden dims to 128-lane multiples (400->512, 300->384; exact:
      zero bias + relu(0)=0 and zero weight rows/cols contribute nothing),
    * pin padded column `hidden2` of b2 to 1 and store fc3's bias there in w3,
      so the final reduce already includes b3,
    * cast MXU weights to `weight_dtype` (bf16 default; pass jnp.float32 for
      exact parity with the torch module at reduced MXU rate).
    """
    w1, b1, w2, b2, w3, b3 = (params["w1"], params["b1"], params["w2"],
                              params["b2"], params["w3"], params["b3"])
    hidden1, input_dim = w1.shape
    hidden2 = w2.shape[0]
    nb_actions = w2.shape[1] - hidden1
    in_total = input_dim + nb_actions
    h1p = _round_up(hidden1, lane)            # 400 -> 512
    h2p = _round_up(hidden2 + 1, lane)        # 300 -> 384 (spare col for b3)

    w1aug_t = jnp.zeros((in_total, h1p), jnp.float32)
    w1aug_t = w1aug_t.at[:input_dim, :hidden1].set(w1.T)

    w2x_t = jnp.zeros((h1p, h2p), jnp.float32)
    w2x_t = w2x_t.at[:hidden1, :hidden2].set(w2[:, :hidden1].T)

    w2a_t = jnp.zeros((in_total, h2p), jnp.float32)
    w2a_t = w2a_t.at[input_dim:, :hidden2].set(w2[:, hidden1:].T)

    b1p = jnp.zeros((1, h1p), jnp.float32).at[0, :hidden1].set(b1)
    b2p = jnp.zeros((1, h2p), jnp.float32).at[0, :hidden2].set(b2)
    b2p = b2p.at[0, hidden2].set(1.0)                      # ones column for b3

    w3p = jnp.zeros((1, h2p), jnp.float32).at[0, :hidden2].set(w3[0])
    w3p = w3p.at[0, hidden2].set(b3[0])                    # folded fc3 bias

    # TODO(synk): optional v7x-only fp8(e4m3)+per-channel-scale path for w2x_t
    # if profiling at large tm shows the fc2 MXU pass (not step overhead) binding.
    return dict(
        w1aug_t=w1aug_t.astype(weight_dtype),
        b1=b1p,
        w2x_t=w2x_t.astype(weight_dtype),
        w2a_t=w2a_t.astype(weight_dtype),
        b2=b2p,
        w3=w3p,                                            # f32 (VPU epilogue)
    )


def critic_reference(x, a, params):
    """Pure-JAX (f32) reference of the PyTorch forward."""
    h1 = jnp.maximum(x @ params["w1"].T + params["b1"], 0.0)
    h = jnp.concatenate([h1, a], axis=1)
    h2 = jnp.maximum(h @ params["w2"].T + params["b2"], 0.0)
    return h2 @ params["w3"].T + params["b3"]


# TODO(synk): checkpoint save/load, .cuda(), and soft/hard_update are host-side
# parameter management with no Pallas equivalent; only forward() is implemented.

if __name__ == "__main__":
    key = jax.random.PRNGKey(0)
    k_param, k_x, k_a = jax.random.split(key, 3)

    batch = 8
    input_dim = 16
    nb_actions = 4
    hidden1 = 400
    hidden2 = 300

    params = init_critic_params(k_param, input_dim, nb_actions, hidden1, hidden2)
    # Prepared once; reused for every forward call.
    kparams = prepare_critic_kernel_params(params)

    x = jax.random.normal(k_x, (batch, input_dim), jnp.float32)
    a = jax.random.normal(k_a, (batch, nb_actions), jnp.float32)

    out = critic_forward(x, a, kparams)
    jax.block_until_ready(out)

    ref = critic_reference(x, a, params)
    assert out.shape == (batch, 1), out.shape
    # Tolerance loosened vs. the f32 reference because matmul inputs are bf16.
    err = jnp.max(jnp.abs(out - ref))
    assert jnp.allclose(out, ref, atol=5e-3, rtol=5e-2), f"mismatch: max err {err}"

    print("KERNEL_OK")
</pallas_src>

<mosaic_0001>
module attributes {stable_mosaic.version = 11 : i64} {
  func.func @_critic_kernel(%arg0: i32, %arg1: memref<8x20xf32, #tpu.memory_space<vmem>>, %arg2: memref<20x512xbf16, #tpu.memory_space<vmem>>, %arg3: memref<1x512xf32, #tpu.memory_space<vmem>>, %arg4: memref<512x384xbf16, #tpu.memory_space<vmem>>, %arg5: memref<20x384xbf16, #tpu.memory_space<vmem>>, %arg6: memref<1x384xf32, #tpu.memory_space<vmem>>, %arg7: memref<1x384xf32, #tpu.memory_space<vmem>>, %arg8: memref<1x8xf32, #tpu.memory_space<vmem>>) attributes {dimension_semantics = [#tpu.dimension_semantics<parallel>], iteration_bounds = array<i64: 1>, scalar_prefetch = 0 : i64, scratch_operands = 0 : i64, tpu.core_type = #tpu.core_type<tc>, window_params = [{transform_indices = @transform_0, window_bounds = array<i64: 8, 20>}, {pipeline_mode = #tpu.pipeline_mode<synchronous>, transform_indices = @transform_1, window_bounds = array<i64: 20, 512>}, {pipeline_mode = #tpu.pipeline_mode<synchronous>, transform_indices = @transform_2, window_bounds = array<i64: 1, 512>}, {pipeline_mode = #tpu.pipeline_mode<synchronous>, transform_indices = @transform_3, window_bounds = array<i64: 512, 384>}, {pipeline_mode = #tpu.pipeline_mode<synchronous>, transform_indices = @transform_4, window_bounds = array<i64: 20, 384>}, {pipeline_mode = #tpu.pipeline_mode<synchronous>, transform_indices = @transform_5, window_bounds = array<i64: 1, 384>}, {pipeline_mode = #tpu.pipeline_mode<synchronous>, transform_indices = @transform_6, window_bounds = array<i64: 1, 384>}, {transform_indices = @transform_7, window_bounds = array<i64: 1, 8>}]} {
    %c0 = arith.constant 0 : index
    %c0_0 = arith.constant 0 : index
    %0 = vector.load %arg1[%c0, %c0_0] : memref<8x20xf32, #tpu.memory_space<vmem>>, vector<8x20xf32>
    %1 = arith.truncf %0 : vector<8x20xf32> to vector<8x20xbf16>
    %c0_1 = arith.constant 0 : index
    %c0_2 = arith.constant 0 : index
    %2 = vector.load %arg2[%c0_1, %c0_2] : memref<20x512xbf16, #tpu.memory_space<vmem>>, vector<20x512xbf16>
    %cst = arith.constant dense<0.000000e+00> : vector<8x512xf32>
    %3 = tpu.matmul %1, %2, %cst {dimension_numbers = #tpu.dot_dimension_numbers<[1], [0], [0], [1], [0, 0, 1, 1], [], []>} : vector<8x20xbf16>, vector<20x512xbf16>, vector<8x512xf32> -> vector<8x512xf32>
    %c0_3 = arith.constant 0 : index
    %c0_4 = arith.constant 0 : index
    %4 = vector.load %arg3[%c0_3, %c0_4] : memref<1x512xf32, #tpu.memory_space<vmem>>, vector<1x512xf32>
    %5 = vector.broadcast %4 : vector<1x512xf32> to vector<8x512xf32>
    %6 = arith.addf %3, %5 : vector<8x512xf32>
    %cst_5 = arith.constant 0.000000e+00 : f32
    %7 = vector.broadcast %cst_5 : f32 to vector<8x512xf32>
    %8 = arith.maximumf %6, %7 : vector<8x512xf32>
    %9 = arith.truncf %8 : vector<8x512xf32> to vector<8x512xbf16>
    %c0_6 = arith.constant 0 : index
    %c0_7 = arith.constant 0 : index
    %10 = vector.load %arg4[%c0_6, %c0_7] : memref<512x384xbf16, #tpu.memory_space<vmem>>, vector<512x384xbf16>
    %cst_8 = arith.constant dense<0.000000e+00> : vector<8x384xf32>
    %11 = tpu.matmul %9, %10, %cst_8 {dimension_numbers = #tpu.dot_dimension_numbers<[1], [0], [0], [1], [0, 0, 1, 1], [], []>} : vector<8x512xbf16>, vector<512x384xbf16>, vector<8x384xf32> -> vector<8x384xf32>
    %c0_9 = arith.constant 0 : index
    %c0_10 = arith.constant 0 : index
    %12 = vector.load %arg5[%c0_9, %c0_10] : memref<20x384xbf16, #tpu.memory_space<vmem>>, vector<20x384xbf16>
    %cst_11 = arith.constant dense<0.000000e+00> : vector<8x384xf32>
    %13 = tpu.matmul %1, %12, %cst_11 {dimension_numbers = #tpu.dot_dimension_numbers<[1], [0], [0], [1], [0, 0, 1, 1], [], []>} : vector<8x20xbf16>, vector<20x384xbf16>, vector<8x384xf32> -> vector<8x384xf32>
    %14 = arith.addf %11, %13 : vector<8x384xf32>
    %c0_12 = arith.constant 0 : index
    %c0_13 = arith.constant 0 : index
    %15 = vector.load %arg6[%c0_12, %c0_13] : memref<1x384xf32, #tpu.memory_space<vmem>>, vector<1x384xf32>
    %16 = vector.broadcast %15 : vector<1x384xf32> to vector<8x384xf32>
    %17 = arith.addf %14, %16 : vector<8x384xf32>
    %cst_14 = arith.constant 0.000000e+00 : f32
    %18 = vector.broadcast %cst_14 : f32 to vector<8x384xf32>
    %19 = arith.maximumf %17, %18 : vector<8x384xf32>
    %c0_15 = arith.constant 0 : index
    %c0_16 = arith.constant 0 : index
    %20 = vector.load %arg7[%c0_15, %c0_16] : memref<1x384xf32, #tpu.memory_space<vmem>>, vector<1x384xf32>
    %21 = vector.broadcast %20 : vector<1x384xf32> to vector<8x384xf32>
    %22 = arith.mulf %19, %21 : vector<8x384xf32>
    %cst_17 = arith.constant dense<0.000000e+00> : vector<8xf32>
    %23 = vector.multi_reduction <add>, %22, %cst_17 [1] : vector<8x384xf32> to vector<8xf32>
    %24 = vector.shape_cast %23 : vector<8xf32> to vector<8x1xf32>
    %25 = vector.shape_cast %24 : vector<8x1xf32> to vector<8xf32>
    %c0_18 = arith.constant 0 : index
    %c0_19 = arith.constant 0 : index
    %26 = vector.load %arg8[%c0_18, %c0_19] : memref<1x8xf32, #tpu.memory_space<vmem>>, vector<1x8xf32>
    %27 = vector.shape_cast %26 : vector<1x8xf32> to vector<8xf32>
    %28 = vector.shape_cast %25 : vector<8xf32> to vector<1x8xf32>
    tpu.vector_store %arg8[%c0_18, %c0_19], %28 {strides = array<i32>} : memref<1x8xf32, #tpu.memory_space<vmem>>, vector<1x8xf32>,
    return
  }
  func.func @transform_0(%arg0: i32) -> (i32, i32) {
    %c0_i32 = arith.constant 0 : i32
    %c0_i32_0 = arith.constant 0 : i32
    return %arg0, %c0_i32 : i32, i32
  }
  func.func @transform_1(%arg0: i32) -> (i32, i32) {
    %c0_i32 = arith.constant 0 : i32
    %c0_i32_0 = arith.constant 0 : i32
    %c0_i32_1 = arith.constant 0 : i32
    return %c0_i32, %c0_i32_0 : i32, i32
  }
  func.func @transform_2(%arg0: i32) -> (i32, i32) {
    %c0_i32 = arith.constant 0 : i32
    %c0_i32_0 = arith.constant 0 : i32
    %c0_i32_1 = arith.constant 0 : i32
    return %c0_i32, %c0_i32_0 : i32, i32
  }
  func.func @transform_3(%arg0: i32) -> (i32, i32) {
    %c0_i32 = arith.constant 0 : i32
    %c0_i32_0 = arith.constant 0 : i32
    %c0_i32_1 = arith.constant 0 : i32
    return %c0_i32, %c0_i32_0 : i32, i32
  }
  func.func @transform_4(%arg0: i32) -> (i32, i32) {
    %c0_i32 = arith.constant 0 : i32
    %c0_i32_0 = arith.constant 0 : i32
    %c0_i32_1 = arith.constant 0 : i32
    return %c0_i32, %c0_i32_0 : i32, i32
  }
  func.func @transform_5(%arg0: i32) -> (i32, i32) {
    %c0_i32 = arith.constant 0 : i32
    %c0_i32_0 = arith.constant 0 : i32
    %c0_i32_1 = arith.constant 0 : i32
    return %c0_i32, %c0_i32_0 : i32, i32
  }
  func.func @transform_6(%arg0: i32) -> (i32, i32) {
    %c0_i32 = arith.constant 0 : i32
    %c0_i32_0 = arith.constant 0 : i32
    %c0_i32_1 = arith.constant 0 : i32
    return %c0_i32, %c0_i32_0 : i32, i32
  }
  func.func @transform_7(%arg0: i32) -> (i32, i32) {
    %c0_i32 = arith.constant 0 : i32
    %c0_i32_0 = arith.constant 0 : i32
    return %arg0, %c0_i32 : i32, i32
  }
}

</mosaic_0001>

<bundles_post_ra>
// kernel: critic_forward.1
= control target key start
LH: loop header
LB: loop body
LE: loop exit
PB: predicated region body
PF: predicated region fallthrough
CT: control target
= control target key end

     0   :  { %12 = vsyncpa [#allocation3], 0  ;;  %s1831_s0 = inlined_call_operand.vmem [shape: f32[8,20], index: 0, kind: input, shape index: {}]   ;;  %s1832_s1 = inlined_call_operand.vmem [shape: bf16[20,512], index: 1, kind: input, shape index: {}]   ;;  %s1833_s2 = inlined_call_operand.hbm [shape: f32[1,512], index: 2, kind: input, shape index: {}]   ;;  %s1834_s3 = inlined_call_operand.hbm [shape: bf16[512,384], index: 3, kind: input, shape index: {}]   ;;  %s1835_s4 = inlined_call_operand.hbm [shape: bf16[20,384], index: 4, kind: input, shape index: {}]   ;;  %s1836_s5 = inlined_call_operand.vmem [shape: f32[1,384], index: 5, kind: input, shape index: {}]   ;;  %s1837_s6 = inlined_call_operand.vmem [shape: f32[1,384], index: 6, kind: input, shape index: {}]   ;;  %s1838_s7 = inlined_call_operand.hbm [shape: f32[1,8], index: 7, kind: output, shape index: {}]  }
   0x1   :  { %13 = vsyncpa [#allocation6], 0 }
   0x2   :  { %14 = vsyncpa [#allocation4], 0  ;;  %s1649_s24 = smov [#allocation5]   ;;  %s1555_s28 = scalar_lea.hbm %s1834_s3, 12288 }
   0x3   :  { %s34_s25 = sshll.u32 %s1649_s24, 4  ;;  %p1556_p0 = scmp.ne.s32.totalorder %s1834_s3, %s1555_s28  ;;  %s35_s25 = int_to_ptr.vmem [resolvable:$true] %s34_s25 }
   0x4   :  { %p1559_p1 = scmp.lt.u32.totalorder %s1555_s28, %s1834_s3 }
   0x6   :  { %p1561_p2 = pnand %p1559_p1, %p1556_p0 }
   0x8   :  { %1564 = shalt.err (!%p1561_p2)
}
   0x9   :  { %s1565_s10 = scalar_lea.vmem %s35_s25, 12288  ;;  %p1570_p4 = scmp.lt.s32.totalorder %s35_s25, %s35_s25 }
   0xa   :  { %p1566_p3 = scmp.ne.s32.totalorder %s35_s25, %s1565_s10  ;;  %p1571_p5 = scmp.lt.s32.totalorder %s1565_s10, %s1565_s10 }
   0xc   :  { %p1572_p6 = por %p1571_p5, %p1570_p4 }
   0xe   :  { %p1573_p7 = pnand %p1572_p6, %p1566_p3 }
  0x10   :  { %1576 = shalt.err (!%p1573_p7)
}
  0x11   :  { %s1650_s11 = smov 192   ;;  %s1651_s12 = smov 12  }
  0x12   :  { %40 = dma.hbm_to_vmem [thread:$0]  %s1834_s3, 12288, %s35_s25, [#allocation6], %s1650_s11, %s1650_s11, %s1651_s12  }
  0x13   :  { %s1652_s15 = smov [#allocation2]   ;;  %s1653_s17 = smov [#allocation7]  }
  0x14   :  { %s25_s16 = sshll.u32 %s1652_s15, 4  ;;  %s46_s18 = sshll.u32 %s1653_s17, 4  ;;  %s26_s16 = int_to_ptr.vmem [resolvable:$true] %s25_s16  ;;  %s47_s18 = int_to_ptr.vmem [resolvable:$true] %s46_s18 }
  0x15   :  { %s1577_s21 = scalar_lea.hbm %s1833_s2, 64 }
  0x16   :  { %p1578_p8 = scmp.ne.s32.totalorder %s1833_s2, %s1577_s21  ;;  %p1581_p9 = scmp.lt.u32.totalorder %s1577_s21, %s1833_s2 }
  0x18   :  { %p1583_p10 = pnand %p1581_p9, %p1578_p8 }
  0x1a   :  { %1586 = shalt.err (!%p1583_p10)
}
  0x1b   :  { %s1587_s3 = scalar_lea.vmem %s26_s16, 64  ;;  %p1592_p12 = scmp.lt.s32.totalorder %s26_s16, %s26_s16 }
  0x1c   :  { %p1588_p11 = scmp.ne.s32.totalorder %s26_s16, %s1587_s3  ;;  %p1593_p13 = scmp.lt.s32.totalorder %s1587_s3, %s1587_s3 }
  0x1e   :  { %p1594_p0 = por %p1593_p13, %p1592_p12 }
  0x20   :  { %p1595_p1 = pnand %p1594_p0, %p1588_p11 }
  0x22   :  { %1598 = shalt.err (!%p1595_p1)
}
  0x23   :  { %28 = dma.hbm_to_vmem [thread:$0]  %s1833_s2, 64, %s26_s16, [#allocation3]  }
  0x24   :  { %s1599_s30 = scalar_lea.hbm %s1835_s4, 576 }
  0x25   :  { %p1600_p2 = scmp.ne.s32.totalorder %s1835_s4, %s1599_s30  ;;  %p1603_p3 = scmp.lt.u32.totalorder %s1599_s30, %s1835_s4 }
  0x27   :  { %p1605_p4 = pnand %p1603_p3, %p1600_p2 }
  0x29   :  { %1608 = shalt.err (!%p1605_p4)
}
  0x2a   :  { %s1609_s14 = scalar_lea.vmem %s47_s18, 576  ;;  %p1614_p6 = scmp.lt.s32.totalorder %s47_s18, %s47_s18 }
  0x2b   :  { %p1610_p5 = scmp.ne.s32.totalorder %s47_s18, %s1609_s14  ;;  %p1615_p7 = scmp.lt.s32.totalorder %s1609_s14, %s1609_s14 }
  0x2d   :  { %p1616_p8 = por %p1615_p7, %p1614_p6 }
  0x2f   :  { %p1617_p9 = pnand %p1616_p8, %p1610_p5 }
  0x31   :  { %1620 = shalt.err (!%p1617_p9)
}
  0x32   :  { %52 = dma.hbm_to_vmem [thread:$0]  %s1835_s4, 576, %s47_s18, [#allocation6], %s1650_s11, %s1650_s11, %s1651_s12  }
  0x33   :  { %1643 = dma.done.wait [#allocation3], 64  }
  0x34   :  { %1644 = vsyncadd [#allocation3], 4294967232 }
  0x35   :  { %1645 = dma.done.wait [#allocation6], 12864  }
  0x36   :  { %1646 = vsyncadd [#allocation6], 4294954432  ;;  %v1654_v0 = vmov 0   ;;  %v1410_v1 = vld [vmem:[%s1832_s1 + $0x4] ss:$16 sps:$4 sm:$0xff]   ;;  %vm131_vm0 = vcmask 1041408  }
  0x37   :  { %176 = vmatprep.mubr.bf16.mxu0 %v1654_v0  ;;  %217 = vmatprep.mubr.bf16.mxu1 %v1654_v0  ;;  %v1412_v2 = vld [vmem:[%s1832_s1 + $0xc] ss:$16 sps:$4 sm:$0xff]   ;;  %v1414_v3 = vld [vmem:[%s1832_s1] ss:$16 sps:$4 sm:$0xff]   ;;  %v1415_v4 = vld [vmem:[%s1832_s1 + $0x8] ss:$16 sps:$4 sm:$0xff]  }
  0x38   :  { %144 = vmatprep.subr.bf16.mxu0 %v1410_v1  ;;  %v73_v5 = vld [vmem:[%s1832_s1 + $0x20] sm:$0x33]  ;;  %185 = vmatprep.subr.bf16.mxu1 %v1412_v2  ;;  %v74_v7 = vld [vmem:[%s1832_s1 + $0x28] sm:$0x33]  ;;  %vm127_vm1 = vcmask 162816   ;;  %v1655_v19 = vmov 0.0  }
  0x39   :  { %v1234_v6 = vcombine.high %v73_v5, %v73_v5  ;;  %v1233_v8 = vcombine.low %v73_v5, %v73_v5  ;;  %145 = vmatpush1.bf16.msra.mxu0 %v1414_v3  ;;  %186 = vmatpush1.bf16.msra.mxu1 %v1415_v4  ;;  %v1236_v9 = vcombine.high %v74_v7, %v74_v7  ;;  %v67_v11 = vld [vmem:[%s1831_s0] sm:$0xff]  ;;  %v1422_v12 = vld [vmem:[#allocation7 + $0x4] ss:$12 sps:$4 sm:$0xff]   ;;  %v1423_v18 = vld [vmem:[#allocation7 + $0x8] ss:$12 sps:$4 sm:$0xff]   ;;  %vm1656_vm2 = vmmov 0  }
  0x3a   :  { %v1235_v10 = vcombine.low %v74_v7, %v74_v7  ;;  %v366_v15 = vld [vmem:[#allocation7 + $0x18] sm:$0x33]  ;;  %v68_v16 = vpack.c.bf16 %v67_v11, %v67_v11  ;;  %v1420_v17 = vld [vmem:[#allocation7] ss:$12 sps:$4 sm:$0xff]   ;;  %v1429_v23 = vld [vmem:[#allocation5 + $0x4] ss:$12 sps:$4 sm:$0xff]  }
  0x3b   :  { %1237 = vmatprep.subr.msk.bf16.mxu0 %vm131_vm0, %v1234_v6  ;;  %v133_v13 = vsel %vm131_vm0, %v1233_v8, 0  ;;  %1239 = vmatprep.subr.msk.bf16.mxu1 %vm131_vm0, %v1236_v9  ;;  %v1245_v20 = vcombine.high %v366_v15, %v366_v15  ;;  %v1244_v21 = vcombine.low %v366_v15, %v366_v15  ;;  %v1426_v22 = vld [vmem:[#allocation7 + $0x20] ss:$0 sps:$4 sm:$0x33]   ;;  %v1432_v26 = vld [vmem:[#allocation5 + $0x184] ss:$12 sps:$4 sm:$0xff]  }
  0x3c   :  { %v139_v14 = vsel %vm131_vm0, %v1235_v10, 0  ;;  %v399_v25 = vsel %vm131_vm0, %v1426_v22, 0  ;;  %v1427_v27 = vld [vmem:[#allocation5] ss:$12 sps:$4 sm:$0xff]   ;;  %v1435_v29 = vld [vmem:[#allocation5 + $0x1c] ss:$12 sps:$4 sm:$0xff]  }
  0x3d   :  { %147 = vmatpush1.bf16.msra.mxu0 %v133_v13  ;;  %188 = vmatpush1.bf16.msra.mxu1 %v139_v14  ;;  %v393_v24 = vsel %vm131_vm0, %v1244_v21, 0  ;;  %v1430_v28 = vld [vmem:[#allocation5 + $0x180] ss:$12 sps:$4 sm:$0xff]   ;;  %v1438_v30 = vld [vmem:[#allocation5 + $0x19c] ss:$12 sps:$4 sm:$0xff]   ;;  %vm1211_vm3 = vcmask 57344  }
  0x3e   :  { %401 = vmatprep.subr.bf16.mxu0 %v1422_v12  ;;  %1393 = vmatprep.subr.bf16.mxu1 %v1655_v19  ;;  %v1433_v31 = vld [vmem:[#allocation5 + $0x18] ss:$12 sps:$4 sm:$0xff]   ;;  %v1441_v33 = vld [vmem:[#allocation5 + $0x34] ss:$12 sps:$4 sm:$0xff]   ;;  %v1439_v35 = vld [vmem:[#allocation5 + $0x30] ss:$12 sps:$4 sm:$0xff]  }
  0x3f   :  { %v1436_v32 = vld [vmem:[#allocation5 + $0x198] ss:$12 sps:$4 sm:$0xff]   ;;  %v1444_v34 = vld [vmem:[#allocation5 + $0x1b4] ss:$12 sps:$4 sm:$0xff]   ;;  %v1442_v36 = vld [vmem:[#allocation5 + $0x1b0] ss:$12 sps:$4 sm:$0xff]  }
  0x40   :  { %1238 = vmatmul.mubr.msk.bf16.vlgmr.msra.gmra.mrb[0].mxu0 %vm127_vm1, %v68_v16  ;;  %1240 = vmatmul.mubr.msk.bf16.vlgmr.msra.gmra.mrb[0].mxu1 %vm127_vm1, %v68_v16  ;;  %v1447_v37 = vld [vmem:[#allocation5 + $0x4c] ss:$12 sps:$4 sm:$0xff]   ;;  %v1445_v39 = vld [vmem:[#allocation5 + $0x48] ss:$12 sps:$4 sm:$0xff]   ;;  %v1453_v41 = vld [vmem:[#allocation5 + $0x64] ss:$12 sps:$4 sm:$0xff]  }
  0x41   :  { %402 = vmatpush1.bf16.msra.mxu0 %v1420_v17  ;;  %1394 = vmatpush3.bf16.msra.mxu1 %v1423_v18  ;;  %v1450_v38 = vld [vmem:[#allocation5 + $0x1cc] ss:$12 sps:$4 sm:$0xff]   ;;  %v1448_v40 = vld [vmem:[#allocation5 + $0x1c8] ss:$12 sps:$4 sm:$0xff]   ;;  %v1456_v42 = vld [vmem:[#allocation5 + $0x1e4] ss:$12 sps:$4 sm:$0xff]  }
  0x42   :  { %1247 = vmatprep.subr.msk.bf16.mxu0 %vm131_vm0, %v1245_v20  ;;  %1395 = vmatprep.subr.bf16.mxu1 %v1655_v19  ;;  %v1451_v43 = vld [vmem:[#allocation5 + $0x60] ss:$12 sps:$4 sm:$0xff]   ;;  %v1459_v45 = vld [vmem:[#allocation5 + $0x7c] ss:$12 sps:$4 sm:$0xff]   ;;  %v1457_v47 = vld [vmem:[#allocation5 + $0x78] ss:$12 sps:$4 sm:$0xff]  }
  0x43   :  { %433 = vmatprep.mubr.bf16.mxu0 %v1654_v0  ;;  %1397 = vmatprep.mubr.msk.bf16.mxu1 %vm1656_vm2, %v1655_v19  ;;  %v1454_v44 = vld [vmem:[#allocation5 + $0x1e0] ss:$12 sps:$4 sm:$0xff]   ;;  %v1462_v46 = vld [vmem:[#allocation5 + $0x1fc] ss:$12 sps:$4 sm:$0xff]   ;;  %v1460_v48 = vld [vmem:[#allocation5 + $0x1f8] ss:$12 sps:$4 sm:$0xff]  }
  0x44   :  { %v1465_v49 = vld [vmem:[#allocation5 + $0x94] ss:$12 sps:$4 sm:$0xff]   ;;  %v1463_v51 = vld [vmem:[#allocation5 + $0x90] ss:$12 sps:$4 sm:$0xff]   ;;  %v1471_v53 = vld [vmem:[#allocation5 + $0xac] ss:$12 sps:$4 sm:$0xff]  }
  0x45   :  { %404 = vmatpush1.bf16.msra.mxu0 %v393_v24  ;;  %1396 = vmatpush3.bf16.msra.mxu1 %v399_v25  ;;  %v1468_v50 = vld [vmem:[#allocation5 + $0x214] ss:$12 sps:$4 sm:$0xff]   ;;  %v1466_v52 = vld [vmem:[#allocation5 + $0x210] ss:$12 sps:$4 sm:$0xff]   ;;  %v1474_v54 = vld [vmem:[#allocation5 + $0x22c] ss:$12 sps:$4 sm:$0xff]  }
  0x46   :  { %994 = vmatprep.subr.bf16.mxu0 %v1429_v23  ;;  %1035 = vmatprep.subr.bf16.mxu1 %v1432_v26  ;;  %v1469_v55 = vld [vmem:[#allocation5 + $0xa8] ss:$12 sps:$4 sm:$0xff]   ;;  %v1477_v57 = vld [vmem:[#allocation5 + $0xc4] ss:$12 sps:$4 sm:$0xff]   ;;  %v1475_v59 = vld [vmem:[#allocation5 + $0xc0] ss:$12 sps:$4 sm:$0xff]  }
  0x47   :  { %v1472_v56 = vld [vmem:[#allocation5 + $0x228] ss:$12 sps:$4 sm:$0xff]   ;;  %v1480_v58 = vld [vmem:[#allocation5 + $0x244] ss:$12 sps:$4 sm:$0xff]   ;;  %v1478_v60 = vld [vmem:[#allocation5 + $0x240] ss:$12 sps:$4 sm:$0xff]  }
  0x48   :  { %1248 = vmatmul.mubr.msk.bf16.vlgmr.msra.gmra.mrb[4].mxu0 %vm127_vm1, %v68_v16  ;;  %1398 = vmatmul.mubr.msk.bf16.vlgmr.msra.gmra.mrb[4].mxu1 %vm127_vm1, %v68_v16  ;;  %v1483_v61 = vld [vmem:[#allocation5 + $0xdc] ss:$12 sps:$4 sm:$0xff]   ;;  %v1481_v63 = vld [vmem:[#allocation5 + $0xd8] ss:$12 sps:$4 sm:$0xff]   ;;  %v1489_v1 = vld [vmem:[#allocation5 + $0xf4] ss:$12 sps:$4 sm:$0xff]  }
  0x49   :  { %995 = vmatpush1.bf16.msra.mxu0 %v1427_v27  ;;  %1036 = vmatpush1.bf16.msra.mxu1 %v1430_v28  ;;  %v1486_v62 = vld [vmem:[#allocation5 + $0x25c] ss:$12 sps:$4 sm:$0xff]   ;;  %v1484_v0 = vld [vmem:[#allocation5 + $0x258] ss:$12 sps:$4 sm:$0xff]   ;;  %v1492_v2 = vld [vmem:[#allocation5 + $0x274] ss:$12 sps:$4 sm:$0xff]   ;;  %v77_v27 = vlaneseq }
  0x4a   :  { %996 = vmatprep.subr.bf16.mxu0 %v1435_v29  ;;  %1037 = vmatprep.subr.bf16.mxu1 %v1438_v30  ;;  %v1487_v3 = vld [vmem:[#allocation5 + $0xf0] ss:$12 sps:$4 sm:$0xff]   ;;  %v1495_v5 = vld [vmem:[#allocation5 + $0x10c] ss:$12 sps:$4 sm:$0xff]   ;;  %v1493_v7 = vld [vmem:[#allocation5 + $0x108] ss:$12 sps:$4 sm:$0xff]  }
  0x4b   :  { %v1490_v4 = vld [vmem:[#allocation5 + $0x270] ss:$12 sps:$4 sm:$0xff]   ;;  %v1498_v6 = vld [vmem:[#allocation5 + $0x28c] ss:$12 sps:$4 sm:$0xff]   ;;  %v1496_v8 = vld [vmem:[#allocation5 + $0x288] ss:$12 sps:$4 sm:$0xff]  }
  0x4c   :  { %v1501_v9 = vld [vmem:[#allocation5 + $0x124] ss:$12 sps:$4 sm:$0xff]   ;;  %v1499_v11 = vld [vmem:[#allocation5 + $0x120] ss:$12 sps:$4 sm:$0xff]   ;;  %v1507_v13 = vld [vmem:[#allocation5 + $0x13c] ss:$12 sps:$4 sm:$0xff]  }
  0x4d   :  { %997 = vmatpush1.bf16.msra.mxu0 %v1433_v31  ;;  %1038 = vmatpush1.bf16.msra.mxu1 %v1436_v32  ;;  %v1504_v10 = vld [vmem:[#allocation5 + $0x2a4] ss:$12 sps:$4 sm:$0xff]   ;;  %v1502_v12 = vld [vmem:[#allocation5 + $0x2a0] ss:$12 sps:$4 sm:$0xff]   ;;  %v1510_v14 = vld [vmem:[#allocation5 + $0x2bc] ss:$12 sps:$4 sm:$0xff]  }
  0x4e   :  { %998 = vmatprep.subr.bf16.mxu0 %v1441_v33  ;;  %1039 = vmatprep.subr.bf16.mxu1 %v1444_v34  ;;  %v1505_v15 = vld [vmem:[#allocation5 + $0x138] ss:$12 sps:$4 sm:$0xff]   ;;  %v1513_v17 = vld [vmem:[#allocation5 + $0x154] ss:$12 sps:$4 sm:$0xff]   ;;  %v1511_v19 = vld [vmem:[#allocation5 + $0x150] ss:$12 sps:$4 sm:$0xff]  }
  0x4f   :  { %v1508_v16 = vld [vmem:[#allocation5 + $0x2b8] ss:$12 sps:$4 sm:$0xff]   ;;  %v1516_v18 = vld [vmem:[#allocation5 + $0x2d4] ss:$12 sps:$4 sm:$0xff]   ;;  %v1514_v20 = vld [vmem:[#allocation5 + $0x2d0] ss:$12 sps:$4 sm:$0xff]  }
  0x50   :  { %v1519_v21 = vld [vmem:[#allocation5 + $0x16c] ss:$12 sps:$4 sm:$0xff]   ;;  %v1517_v23 = vld [vmem:[#allocation5 + $0x168] ss:$12 sps:$4 sm:$0xff]   ;;  %v1773_v28 = vshrl.u32 %v77_v27, 7 }
  0x51   :  { %999 = vmatpush1.bf16.msra.mxu0 %v1439_v35  ;;  %1040 = vmatpush1.bf16.msra.mxu1 %v1442_v36  ;;  %v1522_v22 = vld [vmem:[#allocation5 + $0x2ec] ss:$12 sps:$4 sm:$0xff]   ;;  %v1520_v24 = vld [vmem:[#allocation5 + $0x2e8] ss:$12 sps:$4 sm:$0xff]   ;;  %v75_v31 = vld [vmem:[#allocation2] sm:$0xf] }
  0x52   :  { %1000 = vmatprep.subr.bf16.mxu0 %v1447_v37  ;;  %1041 = vmatprep.subr.bf16.mxu1 %v1450_v38  ;;  %v1523_v25 = vld [vmem:[#allocation5 + $0xc8] ss:$12 sps:$4 sm:$0xff]   ;;  %v1776_v29 = vsub.s32 0, %v1773_v28  ;;  %v1779_v30 = vsub.s32 2, %v1773_v28  ;;  %v1782_v32 = vsub.s32 1, %v1773_v28  ;;  %v91_v33 = vsub.s32 3, %v1773_v28 }
  0x53   :  { %v1524_v26 = vld [vmem:[#allocation5 + $0x248] ss:$12 sps:$4 sm:$0xff]  }
  0x54   :  { %v80_v34 = vrot.slane %v75_v31, %v1776_v29  ;;  %v88_v35 = vrot.slane %v75_v31, %v1779_v30  ;;  %v84_v36 = vrot.slane %v75_v31, %v1782_v32  ;;  %v92_v37 = vrot.slane %v75_v31, %v91_v33  ;;  %v1550_v31 = vld [vmem:[#allocation5 + $0x218] ss:$12 sps:$4 sm:$0xff]   ;;  %v1551_v33 = vld [vmem:[#allocation5 + $0x170] ss:$12 sps:$4 sm:$0xff]  }
  0x55   :  { %1001 = vmatpush1.bf16.msra.mxu0 %v1445_v39  ;;  %1042 = vmatpush1.bf16.msra.mxu1 %v1448_v40 }
  0x56   :  { %1002 = vmatprep.subr.bf16.mxu0 %v1453_v41  ;;  %1043 = vmatprep.subr.bf16.mxu1 %v1456_v42 }
  0x59   :  { %1003 = vmatpush1.bf16.msra.mxu0 %v1451_v43  ;;  %1044 = vmatpush1.bf16.msra.mxu1 %v1454_v44 }
  0x5a   :  { %1004 = vmatprep.subr.bf16.mxu0 %v1459_v45  ;;  %1045 = vmatprep.subr.bf16.mxu1 %v1462_v46 }
  0x5d   :  { %1005 = vmatpush1.bf16.msra.mxu0 %v1457_v47  ;;  %1046 = vmatpush1.bf16.msra.mxu1 %v1460_v48 }
  0x5e   :  { %1006 = vmatprep.subr.bf16.mxu0 %v1465_v49  ;;  %1047 = vmatprep.subr.bf16.mxu1 %v1468_v50 }
  0x61   :  { %1007 = vmatpush1.bf16.msra.mxu0 %v1463_v51  ;;  %1048 = vmatpush1.bf16.msra.mxu1 %v1466_v52 }
  0x62   :  { %1008 = vmatprep.subr.bf16.mxu0 %v1471_v53  ;;  %1049 = vmatprep.subr.bf16.mxu1 %v1474_v54 }
  0x65   :  { %1009 = vmatpush1.bf16.msra.mxu0 %v1469_v55  ;;  %1050 = vmatpush1.bf16.msra.mxu1 %v1472_v56 }
  0x66   :  { %1010 = vmatprep.subr.bf16.mxu0 %v1477_v57  ;;  %1051 = vmatprep.subr.bf16.mxu1 %v1480_v58  ;;  %v1525_v57 = vld [vmem:[#allocation5 + $0x8] ss:$12 sps:$4 sm:$0xff]  }
  0x67   :  { %v1526_v58 = vld [vmem:[#allocation5 + $0x188] ss:$12 sps:$4 sm:$0xff]  }
  0x69   :  { %1011 = vmatpush1.bf16.msra.mxu0 %v1475_v59  ;;  %1052 = vmatpush1.bf16.msra.mxu1 %v1478_v60  ;;  %v1527_v60 = vld [vmem:[#allocation5 + $0xe0] ss:$12 sps:$4 sm:$0xff]  }
  0x6a   :  { %1012 = vmatprep.subr.bf16.mxu0 %v1483_v61  ;;  %1053 = vmatprep.subr.bf16.mxu1 %v1486_v62  ;;  %v1528_v61 = vld [vmem:[#allocation5 + $0x260] ss:$12 sps:$4 sm:$0xff]  }
  0x6d   :  { %1013 = vmatpush1.bf16.msra.mxu0 %v1481_v63  ;;  %1054 = vmatpush1.bf16.msra.mxu1 %v1484_v0 }
  0x6e   :  { %1014 = vmatprep.subr.bf16.mxu0 %v1489_v1  ;;  %1055 = vmatprep.subr.bf16.mxu1 %v1492_v2  ;;  %v1529_v2 = vld [vmem:[#allocation5 + $0x20] ss:$12 sps:$4 sm:$0xff]  }
  0x71   :  { %1015 = vmatpush1.bf16.msra.mxu0 %v1487_v3  ;;  %1056 = vmatpush1.bf16.msra.mxu1 %v1490_v4  ;;  %v1530_v3 = vld [vmem:[#allocation5 + $0x1a0] ss:$12 sps:$4 sm:$0xff]  }
  0x72   :  { %1016 = vmatprep.subr.bf16.mxu0 %v1495_v5  ;;  %1057 = vmatprep.subr.bf16.mxu1 %v1498_v6  ;;  %v1531_v6 = vld [vmem:[#allocation5 + $0xf8] ss:$12 sps:$4 sm:$0xff]  }
  0x75   :  { %1017 = vmatpush1.bf16.msra.mxu0 %v1493_v7  ;;  %1058 = vmatpush1.bf16.msra.mxu1 %v1496_v8  ;;  %v1532_v7 = vld [vmem:[#allocation5 + $0x278] ss:$12 sps:$4 sm:$0xff]  }
  0x76   :  { %1018 = vmatprep.subr.bf16.mxu0 %v1501_v9  ;;  %1059 = vmatprep.subr.bf16.mxu1 %v1504_v10  ;;  %v1533_v10 = vld [vmem:[#allocation5 + $0x38] ss:$12 sps:$4 sm:$0xff]  }
  0x79   :  { %1019 = vmatpush1.bf16.msra.mxu0 %v1499_v11  ;;  %1060 = vmatpush1.bf16.msra.mxu1 %v1502_v12  ;;  %v1534_v11 = vld [vmem:[#allocation5 + $0x1b8] ss:$12 sps:$4 sm:$0xff]   ;;  %v1535_v12 = vld [vmem:[#allocation5 + $0x110] ss:$12 sps:$4 sm:$0xff]  }
  0x7a   :  { %1020 = vmatprep.subr.bf16.mxu0 %v1507_v13  ;;  %1061 = vmatprep.subr.bf16.mxu1 %v1510_v14  ;;  %v1536_v13 = vld [vmem:[#allocation5 + $0x290] ss:$12 sps:$4 sm:$0xff]  }
  0x7b   :  { %v1537_v14 = vld [vmem:[#allocation5 + $0x50] ss:$12 sps:$4 sm:$0xff]  }
  0x7d   :  { %1021 = vmatpush1.bf16.msra.mxu0 %v1505_v15  ;;  %1062 = vmatpush1.bf16.msra.mxu1 %v1508_v16  ;;  %v1538_v15 = vld [vmem:[#allocation5 + $0x1d0] ss:$12 sps:$4 sm:$0xff]   ;;  %v1539_v16 = vld [vmem:[#allocation5 + $0x128] ss:$12 sps:$4 sm:$0xff]  }
  0x7e   :  { %1022 = vmatprep.subr.bf16.mxu0 %v1513_v17  ;;  %1063 = vmatprep.subr.bf16.mxu1 %v1516_v18  ;;  %v1540_v17 = vld [vmem:[#allocation5 + $0x2a8] ss:$12 sps:$4 sm:$0xff]  }
  0x7f   :  { %v1541_v18 = vld [vmem:[#allocation5 + $0x68] ss:$12 sps:$4 sm:$0xff]  }
  0x81   :  { %1023 = vmatpush1.bf16.msra.mxu0 %v1511_v19  ;;  %1064 = vmatpush1.bf16.msra.mxu1 %v1514_v20  ;;  %v1542_v19 = vld [vmem:[#allocation5 + $0x1e8] ss:$12 sps:$4 sm:$0xff]   ;;  %v1543_v20 = vld [vmem:[#allocation5 + $0x140] ss:$12 sps:$4 sm:$0xff]  }
  0x82   :  { %1024 = vmatprep.subr.bf16.mxu0 %v1519_v21  ;;  %1065 = vmatprep.subr.bf16.mxu1 %v1522_v22  ;;  %v1544_v21 = vld [vmem:[#allocation5 + $0x2c0] ss:$12 sps:$4 sm:$0xff]  }
  0x83   :  { %v1545_v22 = vld [vmem:[#allocation5 + $0x80] ss:$12 sps:$4 sm:$0xff]  }
  0x85   :  { %1025 = vmatpush1.bf16.msra.mxu0 %v1517_v23  ;;  %1066 = vmatpush1.bf16.msra.mxu1 %v1520_v24  ;;  %v1546_v23 = vld [vmem:[#allocation5 + $0x200] ss:$12 sps:$4 sm:$0xff]   ;;  %v1547_v24 = vld [vmem:[#allocation5 + $0x158] ss:$12 sps:$4 sm:$0xff]  }
  0x86   :  { %1349 = vmatprep.subr.bf16.mxu0 %v1523_v25  ;;  %1371 = vmatprep.subr.bf16.mxu1 %v1524_v26  ;;  %v1548_v25 = vld [vmem:[#allocation5 + $0x2d8] ss:$12 sps:$4 sm:$0xff]  }
  0x87   :  { %v1549_v26 = vld [vmem:[#allocation5 + $0x98] ss:$12 sps:$4 sm:$0xff]  }
 0x113   :  { %v178_v38 = vpop.f32.mrb[0].mxu0  ;;  %v219_v39 = vpop.f32.mrb[0].mxu1 }
 0x114   :  { %v179_v40 = vadd.f32 %v178_v38, %v80_v34  ;;  %v220_v41 = vadd.f32 %v219_v39, %v88_v35  ;;  %v180_v42 = vpop.f32.mrb[1].mxu0  ;;  %v221_v43 = vpop.f32.mrb[1].mxu1  ;;  %v1552_v34 = vld [vmem:[#allocation5 + $0x2f0] ss:$12 sps:$4 sm:$0xff]  }
 0x115   :  { %v181_v44 = vadd.f32 %v180_v42, %v84_v36  ;;  %v222_v45 = vadd.f32 %v221_v43, %v92_v37  ;;  %v182_v46 = vpop.f32.mrb[2].mxu0  ;;  %v223_v47 = vpop.f32.mrb[2].mxu1  ;;  %v1553_v35 = vld [vmem:[#allocation5 + $0xb0] ss:$12 sps:$4 sm:$0xff]  }
 0x116   :  { %v226_v48 = vmax.f32 %v179_v40, 0.0  ;;  %v228_v49 = vmax.f32 %v220_v41, 0.0  ;;  %v183_v50 = vpop.f32.mrb[3].mxu0  ;;  %v224_v51 = vpop.f32.mrb[3].mxu1  ;;  %v1554_v36 = vld [vmem:[#allocation5 + $0x230] ss:$12 sps:$4 sm:$0xff]  }
 0x117   :  { %v227_v52 = vmax.f32 %v181_v44, 0.0  ;;  %v229_v53 = vmax.f32 %v222_v45, 0.0  ;;  %v1156_v37 = vld [vmem:[%s1836_s5] sm:$0x7]  ;;  %s1657_s5 = smov [#allocation8]  }
 0x118   :  { %v1788_v54 = vpack.c.bf16 %v228_v49, %v228_v49  ;;  %v1790_v59 = vpack.c.bf16 %v226_v48, %v226_v48  ;;  %v1161_v41 = vrot.slane %v1156_v37, %v1776_v29  ;;  %v1165_v45 = vrot.slane %v1156_v37, %v1782_v32  ;;  %v1179_v48 = vld [vmem:[%s1837_s6] sm:$0x7]  ;;  %s1219_s6 = sshll.u32 %s1657_s5, 4  ;;  %s1220_s6 = int_to_ptr.vmem [resolvable:$true] %s1219_s6 }
 0x119   :  { %v231_v55 = vpack.c.bf16 %v227_v52, %v227_v52  ;;  %v233_v56 = vpack.c.bf16 %v229_v53, %v229_v53  ;;  %s1621_s28 = scalar_lea.vmem %s1220_s6, 16  ;;  %s1625_s29 = scalar_lea.vmem %s1220_s6, 32 }
 0x11a   :  { %p1622_p10 = scmp.ne.s32.totalorder %s1220_s6, %s1621_s28  ;;  %p1626_p11 = scmp.lt.s32.totalorder %s1220_s6, %s1220_s6 }
 0x11b   :  { %1026 = vmatprep.mubr.bf16.mxu0 %v231_v55  ;;  %1067 = vmatprep.mubr.bf16.mxu1 %v233_v56  ;;  %v1792_v62 = vpop.f32.mrb[4].mxu0  ;;  %v1794_v63 = vpop.f32.mrb[4].mxu1  ;;  %p1627_p12 = scmp.lt.s32.totalorder %s1625_s29, %s1621_s28 }
 0x11c   :  { %1027 = vmatmul.mubr.bf16.vlgmr.msra.gmra.mrb[8].mxu0 %v1790_v59  ;;  %1068 = vmatmul.mubr.bf16.vlgmr.msra.gmra.mrb[8].mxu1 %v1788_v54  ;;  %v1798_v0 = vpop.f32.mrb[5].mxu0  ;;  %v1399_v1 = vpop.f32.mrb[5].mxu1 }
 0x11d   :  { %1350 = vmatpush3.bf16.msra.mxu0 %v1525_v57  ;;  %1372 = vmatpush3.bf16.msra.mxu1 %v1526_v58  ;;  %v439_v4 = vpop.f32.mrb[6].mxu0  ;;  %v479_v5 = vpop.f32.mrb[6].mxu1  ;;  %p1628_p13 = por %p1627_p12, %p1626_p11 }
 0x11e   :  { %1108 = vmatprep.mubr.bf16.mxu0 %v231_v55  ;;  %1148 = vmatprep.mubr.bf16.mxu1 %v233_v56  ;;  %v440_v8 = vpop.f32.mrb[7].mxu0  ;;  %v1400_v9 = vpop.f32.mrb[7].mxu1  ;;  %v1188_v56 = vrot.slane %v1179_v48, %v1782_v32 }
 0x11f   :  { %1351 = vmatprep.subr.bf16.mxu0 %v1527_v60  ;;  %1373 = vmatprep.subr.bf16.mxu1 %v1528_v61  ;;  %v1169_v9 = vrot.slane %v1156_v37, %v1779_v30  ;;  %p1629_p0 = pnand %p1628_p13, %p1622_p10 }
 0x121   :  { %1352 = vmatpush3.bf16.msra.mxu0 %v1529_v2  ;;  %1374 = vmatpush3.bf16.msra.mxu1 %v1530_v3 }
 0x122   :  { %1353 = vmatprep.subr.bf16.mxu0 %v1531_v6  ;;  %1375 = vmatprep.subr.bf16.mxu1 %v1532_v7 }
 0x125   :  { %1354 = vmatpush3.bf16.msra.mxu0 %v1533_v10  ;;  %1376 = vmatpush3.bf16.msra.mxu1 %v1534_v11  ;;  %v1192_v11 = vrot.slane %v1179_v48, %v1779_v30 }
 0x126   :  { %1355 = vmatprep.subr.bf16.mxu0 %v1535_v12  ;;  %1377 = vmatprep.subr.bf16.mxu1 %v1536_v13 }
 0x129   :  { %1356 = vmatpush3.bf16.msra.mxu0 %v1537_v14  ;;  %1378 = vmatpush3.bf16.msra.mxu1 %v1538_v15  ;;  %v1205_v15 = vand.u32 127, %v77_v27 }
 0x12a   :  { %1357 = vmatprep.subr.bf16.mxu0 %v1539_v16  ;;  %1379 = vmatprep.subr.bf16.mxu1 %v1540_v17 }
 0x12b   :  { %v1208_v16 = vsub.s32 %v1205_v15, %v1773_v28 }
 0x12d   :  { %1358 = vmatpush3.bf16.msra.mxu0 %v1541_v18  ;;  %1380 = vmatpush3.bf16.msra.mxu1 %v1542_v19 }
 0x12e   :  { %1359 = vmatprep.subr.bf16.mxu0 %v1543_v20  ;;  %1381 = vmatprep.subr.bf16.mxu1 %v1544_v21 }
 0x131   :  { %1360 = vmatpush3.bf16.msra.mxu0 %v1545_v22  ;;  %1382 = vmatpush3.bf16.msra.mxu1 %v1546_v23 }
 0x132   :  { %1361 = vmatprep.subr.bf16.mxu0 %v1547_v24  ;;  %1383 = vmatprep.subr.bf16.mxu1 %v1548_v25 }
 0x135   :  { %1362 = vmatpush3.bf16.msra.mxu0 %v1549_v26  ;;  %1384 = vmatpush3.bf16.msra.mxu1 %v1550_v31 }
 0x136   :  { %1363 = vmatprep.subr.bf16.mxu0 %v1551_v33  ;;  %1385 = vmatprep.subr.bf16.mxu1 %v1552_v34 }
 0x139   :  { %1364 = vmatpush3.bf16.msra.mxu0 %v1553_v35  ;;  %1386 = vmatpush3.bf16.msra.mxu1 %v1554_v36 }
 0x13c   :  { %1109 = vmatmul.mubr.bf16.vlgmr.msra.gmra.mrb[12].mxu0 %v1790_v59  ;;  %1149 = vmatmul.mubr.bf16.vlgmr.msra.gmra.mrb[12].mxu1 %v1788_v54  ;;  %v1184_v54 = vrot.slane %v1179_v48, %v1776_v29 }
 0x1ef   :  { %v1028_v38 = vpop.f32.mrb[8].mxu0  ;;  %v1069_v39 = vpop.f32.mrb[8].mxu1 }
 0x1f0   :  { %v1029_v40 = vadd.f32 %v1028_v38, %v1792_v62  ;;  %v1030_v42 = vpop.f32.mrb[9].mxu0  ;;  %v1071_v43 = vpop.f32.mrb[9].mxu1 }
 0x1f1   :  { %v1031_v44 = vadd.f32 %v1030_v42, %v1798_v0  ;;  %v1032_v46 = vpop.f32.mrb[10].mxu0  ;;  %v1073_v47 = vpop.f32.mrb[10].mxu1 }
 0x1f2   :  { %v1070_v49 = vadd.f32 %v1069_v39, %v1029_v40  ;;  %v1033_v50 = vpop.f32.mrb[11].mxu0  ;;  %v1074_v51 = vpop.f32.mrb[11].mxu1 }
 0x1f3   :  { %v1072_v52 = vadd.f32 %v1071_v43, %v1031_v44 }
 0x1f4   :  { %v1173_v53 = vadd.f32 %v1161_v41, %v1070_v49 }
 0x1f5   :  { %v1174_v55 = vadd.f32 %v1165_v45, %v1072_v52 }
 0x1f6   :  { %v1176_v57 = vmax.f32 %v1173_v53, 0.0 }
 0x1f7   :  { %v1177_v58 = vmax.f32 %v1174_v55, 0.0 }
 0x1f8   :  { %v1196_v59 = vmul.f32 %v1184_v54, %v1176_v57 }
 0x1f9   :  { %v1197_v60 = vmul.f32 %v1188_v56, %v1177_v58 }
 0x1fb   :  { %v1199_v61 = vadd.f32 %v1197_v60, %v1196_v59 }
 0x20f   :  { %v1365_v62 = vpop.f32.mrb[12].mxu0  ;;  %v1387_v0 = vpop.f32.mrb[12].mxu1 }
 0x210   :  { %v1366_v1 = vpop.f32.mrb[13].mxu0  ;;  %v1388_v2 = vpop.f32.mrb[13].mxu1 }
 0x211   :  { %v1367_v3 = vadd.f32 %v1366_v1, %v1365_v62  ;;  %v1389_v4 = vadd.f32 %v1388_v2, %v1387_v0  ;;  %v1368_v5 = vpop.f32.mrb[14].mxu0  ;;  %v1390_v6 = vpop.f32.mrb[14].mxu1 }
 0x212   :  { %v1369_v7 = vpop.f32.mrb[15].mxu0  ;;  %v1391_v8 = vpop.f32.mrb[15].mxu1 }
 0x213   :  { %v1111_v29 = vadd.f32 %v1367_v3, %v1794_v63 }
 0x215   :  { %v1151_v32 = vadd.f32 %v1389_v4, %v1111_v29 }
 0x217   :  { %v1175_v10 = vadd.f32 %v1169_v9, %v1151_v32 }
 0x219   :  { %v1178_v12 = vmax.f32 %v1175_v10, 0.0 }
 0x21b   :  { %v1198_v13 = vmul.f32 %v1192_v11, %v1178_v12 }
 0x21d   :  { %v1200_v14 = vadd.f32 %v1199_v61, %v1198_v13 }
 0x21f   :  { %1201 = vadd.xlane.f32.xlu0 %v1200_v14 }
 0x2ac   :  { %v1202_v17 = vpop.xlane.xlu0 %1201 }
 0x2ad   :  { %v1209_v18 = vrot.slane %v1202_v17, %v1208_v16 }
 0x2af   :  { %1212 = vst.msk [vmem:[#allocation8] sm:$0x1] %vm1211_vm3, %v1209_v18 }
 0x2b0   :  { %1632 = shalt.err (!%p1629_p0)
}
 0x2b1   :  { %s1633_s9 = scalar_lea.hbm %s1838_s7, 16 }
 0x2b2   :  { %p1634_p1 = scmp.ne.s32.totalorder %s1838_s7, %s1633_s9  ;;  %p1637_p2 = scmp.lt.u32.totalorder %s1633_s9, %s1838_s7 }
 0x2b4   :  { %p1639_p3 = pnand %p1637_p2, %p1634_p1 }
 0x2b6   :  { %1642 = shalt.err (!%p1639_p3)
}
 0x2b7   :  { %1222 = dma.vmem_to_hbm [thread:$0]  %s1220_s6, 16, %s1838_s7, [#allocation4]  }
 0x2b8   :  { %1647 = dma.done.wait [#allocation4], 16  }
 0x2b9   :  { %1648 = vsyncadd [#allocation4], 4294967280 }
 0x2ba   :  { %1226 = vsyncpa [#allocation3], 1 }
 0x2bb   :  { %1227 = vsyncpa [#allocation6], 1 }
 0x2bc   :  { %1228 = vsyncpa [#allocation4], 1 }

</bundles_post_ra>
